<compile_context>
chip_gen: v5e
topology: v5e:2x2
jax: 0.10.0
libtpu: 0.0.40
codegen_flags: <defaults>
</compile_context>

<pallas_src>
import jax
import jax.numpy as jnp
from jax import lax
from jax.experimental import pallas as pl
from jax.experimental.pallas import tpu as pltpu

# ---- problem sizes (small, consistent with the module) ----
B = 2            # batch
S = 8            # query sequence length
K = 16           # key/memory sequence length
HS = 40          # hidden size (a_dim = m_dim = output_dim)
N_HEAD = 5       # num_head (fixed by the module)
KD = HS // N_HEAD    # key_dim per head
VD = HS // N_HEAD    # value_dim per head

PAD = 128            # lane-aligned start of the second fused-weight half
WPROJ = 2 * PAD      # fused projection width: [wq|0...|wg|0...], [wk|0...|wv|0...]

DTYPE = jnp.bfloat16


def _mm(a, b, dims=(((1,), (0,)), ((), ()))):
    """bf16 x bf16 matmul on the MXU with f32 accumulation."""
    return lax.dot_general(a, b, dims, preferred_element_type=jnp.float32)


def cross_attn_kernel(q_ref, m_ref, bias_ref, mask_ref, wqg_ref, wkv_ref,
                      gb_ref, wo_ref, ob_ref, o_ref):
    """Both batch elements and all heads fused in a single kernel invocation."""
    # Leading-dim merges (S = 8, K = 16 are sublane-aligned) -> free relayouts.
    q_all = q_ref[...].reshape(B * S, HS)                     # [16, 40] bf16
    m_all = m_ref[...].reshape(B * K, HS)                     # [32, 40] bf16
    bias_all = bias_ref[...].reshape(B, N_HEAD * S, K).astype(jnp.float32)
    mask = mask_ref[...]                                      # [N*S, HS] f32 0/1

    # --- batch-stacked fused projections: 2 MXU pushes for both batches -----
    qg = _mm(q_all, wqg_ref[...])                             # [16, WPROJ] f32
    kv = _mm(m_all, wkv_ref[...])                             # [32, WPROJ] f32

    q_all_f32 = qg[:, :HS]                                    # scale folded in wq
    gate_all = jax.nn.sigmoid(qg[:, PAD:PAD + HS]
                              + gb_ref[...].astype(jnp.float32))   # [16, 40] f32
    k_all_bf = kv[:, :HS].astype(jnp.bfloat16)                # [32, 40]
    v_all_bf = kv[:, PAD:PAD + HS].astype(jnp.bfloat16)       # [32, 40]

    # --- per-batch logits / softmax / weighted average (chains interleaved
    #     by the scheduler; all slices are 8-row sublane-aligned) ------------
    gated = []
    for b in range(B):
        qb = q_all_f32[b * S:(b + 1) * S, :]                  # [8, 40]  f32
        kb = k_all_bf[b * K:(b + 1) * K, :]                   # [16, 40] bf16
        vb = v_all_bf[b * K:(b + 1) * K, :]                   # [16, 40] bf16

        # all-head logits in a single matmul: block-masked replicated q
        q_rep = jnp.concatenate([qb] * N_HEAD, axis=0)        # [N*S, HS] f32
        a_bf = (q_rep * mask).astype(jnp.bfloat16)            # [N*S, HS]
        logits = _mm(a_bf, kb, (((1,), (1,)), ((), ())))      # [N*S, K]  f32
        logits = logits + bias_all[b]

        # one fused softmax for all heads (f32)
        logits = logits - jnp.max(logits, axis=-1, keepdims=True)
        p = jnp.exp(logits)
        w = p * pl.reciprocal(jnp.sum(p, axis=-1, keepdims=True), approx=True)

        # all-head weighted averages in one matmul; fold the diagonal blocks
        full = _mm(w.astype(jnp.bfloat16), vb)                # [N*S, HS] f32
        full = full * mask                                    # KD == VD
        wa = full[0:S, :]
        for h in range(1, N_HEAD):
            wa = wa + full[h * S:(h + 1) * S, :]              # [S, HS] f32

        gate_b = gate_all[b * S:(b + 1) * S, :]
        gated.append((wa * gate_b).astype(jnp.bfloat16))      # [S, HS] bf16

    # --- single batch-stacked output projection ------------------------------
    gated_all = jnp.concatenate(gated, axis=0)                # [B*S, HS] bf16
    out = _mm(gated_all, wo_ref[...]) + ob_ref[...].astype(jnp.float32)
    o_ref[...] = out.reshape(B, S, HS).astype(o_ref.dtype)


def prepare_params(params):
    """One-time (setup-time) parameter plumbing; NOT in the per-call path."""
    wq, wk, wv, wg, gb, wo, ob = params
    scale = jnp.float32(KD) ** -0.5

    # Fold the q scale into wq; pad so the gate/value halves start at lane 128.
    wq_s = (wq.astype(jnp.float32) * scale).astype(DTYPE)
    wqg = jnp.zeros((HS, WPROJ), DTYPE)
    wqg = wqg.at[:, :HS].set(wq_s).at[:, PAD:PAD + HS].set(wg)
    wkv = jnp.zeros((HS, WPROJ), DTYPE)
    wkv = wkv.at[:, :HS].set(wk).at[:, PAD:PAD + HS].set(wv)

    # Precomputed per-head block-diagonal 0/1 mask [N*S, HS] (f32).
    rh = jnp.arange(N_HEAD * S, dtype=jnp.int32) // S
    ch = jnp.arange(HS, dtype=jnp.int32) // KD
    mask = (rh[:, None] == ch[None, :]).astype(jnp.float32)

    return (mask, wqg, wkv, gb, wo, ob)


@jax.jit
def batched_cross_attention(q_data, m_data, batched_bias, prepared):
    mask, wqg, wkv, gb, wo, ob = prepared

    def full_spec(shape):
        return pl.BlockSpec(shape, lambda i, _s=shape: (0,) * len(_s))

    return pl.pallas_call(
        cross_attn_kernel,
        out_shape=jax.ShapeDtypeStruct((B, S, HS), DTYPE),
        grid_spec=pltpu.PrefetchScalarGridSpec(
            num_scalar_prefetch=0,
            grid=(1,),                                  # collapsed: one step
            in_specs=[
                full_spec((B, S, HS)),                  # q_data
                full_spec((B, K, HS)),                  # m_data
                full_spec((B, N_HEAD, S, K)),           # batched bias
                full_spec((N_HEAD * S, HS)),            # head block-diag mask
                full_spec((HS, WPROJ)),                 # wq | wg (padded)
                full_spec((HS, WPROJ)),                 # wk | wv (padded)
                full_spec((1, HS)),                     # gb
                full_spec((HS, HS)),                    # wo
                full_spec((1, HS)),                     # ob
            ],
            out_specs=full_spec((B, S, HS)),
        ),
        compiler_params=pltpu.CompilerParams(
            dimension_semantics=("arbitrary",)),
    )(q_data, m_data, batched_bias, mask, wqg, wkv, gb, wo, ob)


def reference(q_data, m_data, batched_bias, params):
    """Pure-JAX f32 reference of the same math."""
    wq, wk, wv, wg, gb, wo, ob = [p.astype(jnp.float32) for p in params]
    qd = q_data.astype(jnp.float32)
    md = m_data.astype(jnp.float32)
    bias = batched_bias.astype(jnp.float32)

    q = jnp.einsum('bsa,ac->bsc', qd, wq).reshape(B, S, N_HEAD, KD) * KD ** -0.5
    k = jnp.einsum('bka,ac->bkc', md, wk).reshape(B, K, N_HEAD, KD)
    v = jnp.einsum('bka,ac->bkc', md, wv).reshape(B, K, N_HEAD, VD)
    logits = jnp.einsum('bqhc,bkhc->bhqk', q, k) + bias
    w = jax.nn.softmax(logits, axis=-1)
    wa = jnp.einsum('bhqk,bkhc->bqhc', w, v)
    gate = jax.nn.sigmoid(jnp.einsum('bsa,ac->bsc', qd, wg) + gb[0])
    wa = wa.reshape(B, S, N_HEAD * VD) * gate
    return jnp.einsum('bsc,co->bso', wa, wo) + ob[0]


if __name__ == "__main__":
    key = jax.random.PRNGKey(0)
    ks = jax.random.split(key, 10)

    # inputs (deterministic)
    q_data = jax.random.normal(ks[0], (B, S, HS), jnp.float32).astype(DTYPE)
    m_data = jax.random.normal(ks[1], (B, K, HS), jnp.float32).astype(DTYPE)
    batched_bias = jax.random.normal(ks[2], (B, N_HEAD, S, K), jnp.float32).astype(DTYPE)

    # parameters (deterministic, synthetic)
    init = lambda k, shape, s: (jax.random.normal(k, shape, jnp.float32) * s).astype(DTYPE)
    wq = init(ks[3], (HS, N_HEAD * KD), 0.1)
    wk = init(ks[4], (HS, N_HEAD * KD), 0.1)
    wv = init(ks[5], (HS, N_HEAD * VD), 0.1)
    wg = init(ks[6], (HS, N_HEAD * VD), 0.1)
    gb = jnp.ones((1, N_HEAD * VD), DTYPE)     # gating bias init = 1 (AF convention)
    wo = init(ks[7], (N_HEAD * VD, HS), 0.1)
    ob = jnp.zeros((1, HS), DTYPE)
    params = (wq, wk, wv, wg, gb, wo, ob)

    # One-time parameter plumbing (outside the jitted per-call path).
    prepared = prepare_params(params)

    out = batched_cross_attention(q_data, m_data, batched_bias, prepared)
    out = jax.block_until_ready(out)

    ref = reference(q_data, m_data, batched_bias, params)
    assert out.shape == (B, S, HS) and out.dtype == DTYPE
    assert jnp.allclose(out.astype(jnp.float32), ref, atol=4e-2, rtol=4e-2), (
        float(jnp.max(jnp.abs(out.astype(jnp.float32) - ref))))

    print("KERNEL_OK")
</pallas_src>

<mosaic_0001>
module attributes {stable_mosaic.version = 11 : i64} {
  func.func @cross_attn_kernel(%arg0: i32, %arg1: memref<2x8x40xbf16, #tpu.memory_space<vmem>>, %arg2: memref<2x16x40xbf16, #tpu.memory_space<vmem>>, %arg3: memref<2x5x8x16xbf16, #tpu.memory_space<vmem>>, %arg4: memref<40x40xf32, #tpu.memory_space<vmem>>, %arg5: memref<40x256xbf16, #tpu.memory_space<vmem>>, %arg6: memref<40x256xbf16, #tpu.memory_space<vmem>>, %arg7: memref<1x40xbf16, #tpu.memory_space<vmem>>, %arg8: memref<40x40xbf16, #tpu.memory_space<vmem>>, %arg9: memref<1x40xbf16, #tpu.memory_space<vmem>>, %arg10: memref<2x8x40xbf16, #tpu.memory_space<vmem>>) attributes {dimension_semantics = [#tpu.dimension_semantics<arbitrary>], iteration_bounds = array<i64: 1>, scalar_prefetch = 0 : i64, scratch_operands = 0 : i64, tpu.core_type = #tpu.core_type<tc>, window_params = [{pipeline_mode = #tpu.pipeline_mode<synchronous>, transform_indices = @transform_0, window_bounds = array<i64: 2, 8, 40>}, {pipeline_mode = #tpu.pipeline_mode<synchronous>, transform_indices = @transform_1, window_bounds = array<i64: 2, 16, 40>}, {pipeline_mode = #tpu.pipeline_mode<synchronous>, transform_indices = @transform_2, window_bounds = array<i64: 2, 5, 8, 16>}, {pipeline_mode = #tpu.pipeline_mode<synchronous>, transform_indices = @transform_3, window_bounds = array<i64: 40, 40>}, {pipeline_mode = #tpu.pipeline_mode<synchronous>, transform_indices = @transform_4, window_bounds = array<i64: 40, 256>}, {pipeline_mode = #tpu.pipeline_mode<synchronous>, transform_indices = @transform_5, window_bounds = array<i64: 40, 256>}, {pipeline_mode = #tpu.pipeline_mode<synchronous>, transform_indices = @transform_6, window_bounds = array<i64: 1, 40>}, {pipeline_mode = #tpu.pipeline_mode<synchronous>, transform_indices = @transform_7, window_bounds = array<i64: 40, 40>}, {pipeline_mode = #tpu.pipeline_mode<synchronous>, transform_indices = @transform_8, window_bounds = array<i64: 1, 40>}, {pipeline_mode = #tpu.pipeline_mode<synchronous>, transform_indices = @transform_9, window_bounds = array<i64: 2, 8, 40>}]} {
    %c0 = arith.constant 0 : index
    %c0_0 = arith.constant 0 : index
    %c0_1 = arith.constant 0 : index
    %0 = vector.load %arg1[%c0, %c0_0, %c0_1] : memref<2x8x40xbf16, #tpu.memory_space<vmem>>, vector<2x8x40xbf16>
    %1 = vector.shape_cast %0 : vector<2x8x40xbf16> to vector<16x40xbf16>
    %c0_2 = arith.constant 0 : index
    %c0_3 = arith.constant 0 : index
    %c0_4 = arith.constant 0 : index
    %2 = vector.load %arg2[%c0_2, %c0_3, %c0_4] : memref<2x16x40xbf16, #tpu.memory_space<vmem>>, vector<2x16x40xbf16>
    %3 = vector.shape_cast %2 : vector<2x16x40xbf16> to vector<32x40xbf16>
    %c0_5 = arith.constant 0 : index
    %c0_6 = arith.constant 0 : index
    %c0_7 = arith.constant 0 : index
    %c0_8 = arith.constant 0 : index
    %4 = vector.load %arg3[%c0_5, %c0_6, %c0_7, %c0_8] : memref<2x5x8x16xbf16, #tpu.memory_space<vmem>>, vector<2x5x8x16xbf16>
    %5 = vector.shape_cast %4 : vector<2x5x8x16xbf16> to vector<2x40x16xbf16>
    %6 = arith.extf %5 : vector<2x40x16xbf16> to vector<2x40x16xf32>
    %c0_9 = arith.constant 0 : index
    %c0_10 = arith.constant 0 : index
    %7 = vector.load %arg4[%c0_9, %c0_10] : memref<40x40xf32, #tpu.memory_space<vmem>>, vector<40x40xf32>
    %c0_11 = arith.constant 0 : index
    %c0_12 = arith.constant 0 : index
    %8 = vector.load %arg5[%c0_11, %c0_12] : memref<40x256xbf16, #tpu.memory_space<vmem>>, vector<40x256xbf16>
    %cst = arith.constant dense<0.000000e+00> : vector<16x256xf32>
    %9 = tpu.matmul %1, %8, %cst {dimension_numbers = #tpu.dot_dimension_numbers<[1], [0], [0], [1], [0, 0, 1, 1], [], []>} : vector<16x40xbf16>, vector<40x256xbf16>, vector<16x256xf32> -> vector<16x256xf32>
    %c0_13 = arith.constant 0 : index
    %c0_14 = arith.constant 0 : index
    %10 = vector.load %arg6[%c0_13, %c0_14] : memref<40x256xbf16, #tpu.memory_space<vmem>>, vector<40x256xbf16>
    %cst_15 = arith.constant dense<0.000000e+00> : vector<32x256xf32>
    %11 = tpu.matmul %3, %10, %cst_15 {dimension_numbers = #tpu.dot_dimension_numbers<[1], [0], [0], [1], [0, 0, 1, 1], [], []>} : vector<32x40xbf16>, vector<40x256xbf16>, vector<32x256xf32> -> vector<32x256xf32>
    %12 = vector.extract_strided_slice %9 {offsets = [0, 0], sizes = [16, 40], strides = [1, 1]} : vector<16x256xf32> to vector<16x40xf32>
    %13 = vector.extract_strided_slice %9 {offsets = [0, 128], sizes = [16, 40], strides = [1, 1]} : vector<16x256xf32> to vector<16x40xf32>
    %c0_16 = arith.constant 0 : index
    %c0_17 = arith.constant 0 : index
    %14 = vector.load %arg7[%c0_16, %c0_17] : memref<1x40xbf16, #tpu.memory_space<vmem>>, vector<1x40xbf16>
    %15 = arith.extf %14 : vector<1x40xbf16> to vector<1x40xf32>
    %16 = vector.broadcast %15 : vector<1x40xf32> to vector<16x40xf32>
    %17 = arith.addf %13, %16 : vector<16x40xf32>
    %18 = arith.negf %17 : vector<16x40xf32>
    %19 = math.exp %18 : vector<16x40xf32>
    %cst_18 = arith.constant 1.000000e+00 : f32
    %20 = vector.broadcast %cst_18 : f32 to vector<16x40xf32>
    %21 = arith.addf %20, %19 : vector<16x40xf32>
    %22 = arith.divf %20, %21 : vector<16x40xf32>
    %23 = vector.extract_strided_slice %11 {offsets = [0, 0], sizes = [32, 40], strides = [1, 1]} : vector<32x256xf32> to vector<32x40xf32>
    %24 = arith.truncf %23 : vector<32x40xf32> to vector<32x40xbf16>
    %25 = vector.extract_strided_slice %11 {offsets = [0, 128], sizes = [32, 40], strides = [1, 1]} : vector<32x256xf32> to vector<32x40xf32>
    %26 = arith.truncf %25 : vector<32x40xf32> to vector<32x40xbf16>
    %27 = vector.extract_strided_slice %12 {offsets = [0, 0], sizes = [8, 40], strides = [1, 1]} : vector<16x40xf32> to vector<8x40xf32>
    %28 = vector.extract_strided_slice %24 {offsets = [0, 0], sizes = [16, 40], strides = [1, 1]} : vector<32x40xbf16> to vector<16x40xbf16>
    %29 = vector.extract_strided_slice %26 {offsets = [0, 0], sizes = [16, 40], strides = [1, 1]} : vector<32x40xbf16> to vector<16x40xbf16>
    %30 = tpu.concatenate %27, %27, %27, %27, %27 in 0 : vector<8x40xf32>, vector<8x40xf32>, vector<8x40xf32>, vector<8x40xf32>, vector<8x40xf32> -> vector<40x40xf32>
    %31 = arith.mulf %30, %7 : vector<40x40xf32>
    %32 = arith.truncf %31 : vector<40x40xf32> to vector<40x40xbf16>
    %cst_19 = arith.constant dense<0.000000e+00> : vector<40x16xf32>
    %33 = tpu.matmul %32, %28, %cst_19 {dimension_numbers = #tpu.dot_dimension_numbers<[1], [1], [0], [0], [0, 0, 1, 0], [], []>} : vector<40x40xbf16>, vector<16x40xbf16>, vector<40x16xf32> -> vector<40x16xf32>
    %34 = vector.extract_strided_slice %6 {offsets = [0, 0, 0], sizes = [1, 40, 16], strides = [1, 1, 1]} : vector<2x40x16xf32> to vector<1x40x16xf32>
    %35 = vector.shape_cast %34 : vector<1x40x16xf32> to vector<40x16xf32>
    %36 = arith.addf %33, %35 : vector<40x16xf32>
    %cst_20 = arith.constant dense<0xFF800000> : vector<40xf32>
    %37 = vector.multi_reduction <maximumf>, %36, %cst_20 [1] : vector<40x16xf32> to vector<40xf32>
    %38 = vector.shape_cast %37 : vector<40xf32> to vector<40x1xf32>
    %39 = vector.broadcast %38 : vector<40x1xf32> to vector<40x16xf32>
    %40 = arith.subf %36, %39 : vector<40x16xf32>
    %41 = math.exp %40 : vector<40x16xf32>
    %cst_21 = arith.constant dense<0.000000e+00> : vector<40xf32>
    %42 = vector.multi_reduction <add>, %41, %cst_21 [1] : vector<40x16xf32> to vector<40xf32>
    %43 = vector.shape_cast %42 : vector<40xf32> to vector<40x1xf32>
    %44 = tpu.reciprocal %43 {approx = true} : vector<40x1xf32> -> vector<40x1xf32>
    %45 = vector.broadcast %44 : vector<40x1xf32> to vector<40x16xf32>
    %46 = arith.mulf %41, %45 : vector<40x16xf32>
    %47 = arith.truncf %46 : vector<40x16xf32> to vector<40x16xbf16>
    %cst_22 = arith.constant dense<0.000000e+00> : vector<40x40xf32>
    %48 = tpu.matmul %47, %29, %cst_22 {dimension_numbers = #tpu.dot_dimension_numbers<[1], [0], [0], [1], [0, 0, 1, 1], [], []>} : vector<40x16xbf16>, vector<16x40xbf16>, vector<40x40xf32> -> vector<40x40xf32>
    %49 = arith.mulf %48, %7 : vector<40x40xf32>
    %50 = vector.extract_strided_slice %49 {offsets = [0, 0], sizes = [8, 40], strides = [1, 1]} : vector<40x40xf32> to vector<8x40xf32>
    %51 = vector.extract_strided_slice %49 {offsets = [8, 0], sizes = [8, 40], strides = [1, 1]} : vector<40x40xf32> to vector<8x40xf32>
    %52 = arith.addf %50, %51 : vector<8x40xf32>
    %53 = vector.extract_strided_slice %49 {offsets = [16, 0], sizes = [8, 40], strides = [1, 1]} : vector<40x40xf32> to vector<8x40xf32>
    %54 = arith.addf %52, %53 : vector<8x40xf32>
    %55 = vector.extract_strided_slice %49 {offsets = [24, 0], sizes = [8, 40], strides = [1, 1]} : vector<40x40xf32> to vector<8x40xf32>
    %56 = arith.addf %54, %55 : vector<8x40xf32>
    %57 = vector.extract_strided_slice %49 {offsets = [32, 0], sizes = [8, 40], strides = [1, 1]} : vector<40x40xf32> to vector<8x40xf32>
    %58 = arith.addf %56, %57 : vector<8x40xf32>
    %59 = vector.extract_strided_slice %22 {offsets = [0, 0], sizes = [8, 40], strides = [1, 1]} : vector<16x40xf32> to vector<8x40xf32>
    %60 = arith.mulf %58, %59 : vector<8x40xf32>
    %61 = arith.truncf %60 : vector<8x40xf32> to vector<8x40xbf16>
    %62 = vector.extract_strided_slice %12 {offsets = [8, 0], sizes = [8, 40], strides = [1, 1]} : vector<16x40xf32> to vector<8x40xf32>
    %63 = vector.extract_strided_slice %24 {offsets = [16, 0], sizes = [16, 40], strides = [1, 1]} : vector<32x40xbf16> to vector<16x40xbf16>
    %64 = vector.extract_strided_slice %26 {offsets = [16, 0], sizes = [16, 40], strides = [1, 1]} : vector<32x40xbf16> to vector<16x40xbf16>
    %65 = tpu.concatenate %62, %62, %62, %62, %62 in 0 : vector<8x40xf32>, vector<8x40xf32>, vector<8x40xf32>, vector<8x40xf32>, vector<8x40xf32> -> vector<40x40xf32>
    %66 = arith.mulf %65, %7 : vector<40x40xf32>
    %67 = arith.truncf %66 : vector<40x40xf32> to vector<40x40xbf16>
    %cst_23 = arith.constant dense<0.000000e+00> : vector<40x16xf32>
    %68 = tpu.matmul %67, %63, %cst_23 {dimension_numbers = #tpu.dot_dimension_numbers<[1], [1], [0], [0], [0, 0, 1, 0], [], []>} : vector<40x40xbf16>, vector<16x40xbf16>, vector<40x16xf32> -> vector<40x16xf32>
    %69 = vector.extract_strided_slice %6 {offsets = [1, 0, 0], sizes = [1, 40, 16], strides = [1, 1, 1]} : vector<2x40x16xf32> to vector<1x40x16xf32>
    %70 = vector.shape_cast %69 : vector<1x40x16xf32> to vector<40x16xf32>
    %71 = arith.addf %68, %70 : vector<40x16xf32>
    %cst_24 = arith.constant dense<0xFF800000> : vector<40xf32>
    %72 = vector.multi_reduction <maximumf>, %71, %cst_24 [1] : vector<40x16xf32> to vector<40xf32>
    %73 = vector.shape_cast %72 : vector<40xf32> to vector<40x1xf32>
    %74 = vector.broadcast %73 : vector<40x1xf32> to vector<40x16xf32>
    %75 = arith.subf %71, %74 : vector<40x16xf32>
    %76 = math.exp %75 : vector<40x16xf32>
    %cst_25 = arith.constant dense<0.000000e+00> : vector<40xf32>
    %77 = vector.multi_reduction <add>, %76, %cst_25 [1] : vector<40x16xf32> to vector<40xf32>
    %78 = vector.shape_cast %77 : vector<40xf32> to vector<40x1xf32>
    %79 = tpu.reciprocal %78 {approx = true} : vector<40x1xf32> -> vector<40x1xf32>
    %80 = vector.broadcast %79 : vector<40x1xf32> to vector<40x16xf32>
    %81 = arith.mulf %76, %80 : vector<40x16xf32>
    %82 = arith.truncf %81 : vector<40x16xf32> to vector<40x16xbf16>
    %cst_26 = arith.constant dense<0.000000e+00> : vector<40x40xf32>
    %83 = tpu.matmul %82, %64, %cst_26 {dimension_numbers = #tpu.dot_dimension_numbers<[1], [0], [0], [1], [0, 0, 1, 1], [], []>} : vector<40x16xbf16>, vector<16x40xbf16>, vector<40x40xf32> -> vector<40x40xf32>
    %84 = arith.mulf %83, %7 : vector<40x40xf32>
    %85 = vector.extract_strided_slice %84 {offsets = [0, 0], sizes = [8, 40], strides = [1, 1]} : vector<40x40xf32> to vector<8x40xf32>
    %86 = vector.extract_strided_slice %84 {offsets = [8, 0], sizes = [8, 40], strides = [1, 1]} : vector<40x40xf32> to vector<8x40xf32>
    %87 = arith.addf %85, %86 : vector<8x40xf32>
    %88 = vector.extract_strided_slice %84 {offsets = [16, 0], sizes = [8, 40], strides = [1, 1]} : vector<40x40xf32> to vector<8x40xf32>
    %89 = arith.addf %87, %88 : vector<8x40xf32>
    %90 = vector.extract_strided_slice %84 {offsets = [24, 0], sizes = [8, 40], strides = [1, 1]} : vector<40x40xf32> to vector<8x40xf32>
    %91 = arith.addf %89, %90 : vector<8x40xf32>
    %92 = vector.extract_strided_slice %84 {offsets = [32, 0], sizes = [8, 40], strides = [1, 1]} : vector<40x40xf32> to vector<8x40xf32>
    %93 = arith.addf %91, %92 : vector<8x40xf32>
    %94 = vector.extract_strided_slice %22 {offsets = [8, 0], sizes = [8, 40], strides = [1, 1]} : vector<16x40xf32> to vector<8x40xf32>
    %95 = arith.mulf %93, %94 : vector<8x40xf32>
    %96 = arith.truncf %95 : vector<8x40xf32> to vector<8x40xbf16>
    %97 = tpu.concatenate %61, %96 in 0 : vector<8x40xbf16>, vector<8x40xbf16> -> vector<16x40xbf16>
    %c0_27 = arith.constant 0 : index
    %c0_28 = arith.constant 0 : index
    %98 = vector.load %arg8[%c0_27, %c0_28] : memref<40x40xbf16, #tpu.memory_space<vmem>>, vector<40x40xbf16>
    %cst_29 = arith.constant dense<0.000000e+00> : vector<16x40xf32>
    %99 = tpu.matmul %97, %98, %cst_29 {dimension_numbers = #tpu.dot_dimension_numbers<[1], [0], [0], [1], [0, 0, 1, 1], [], []>} : vector<16x40xbf16>, vector<40x40xbf16>, vector<16x40xf32> -> vector<16x40xf32>
    %c0_30 = arith.constant 0 : index
    %c0_31 = arith.constant 0 : index
    %100 = vector.load %arg9[%c0_30, %c0_31] : memref<1x40xbf16, #tpu.memory_space<vmem>>, vector<1x40xbf16>
    %101 = arith.extf %100 : vector<1x40xbf16> to vector<1x40xf32>
    %102 = vector.broadcast %101 : vector<1x40xf32> to vector<16x40xf32>
    %103 = arith.addf %99, %102 : vector<16x40xf32>
    %104 = vector.shape_cast %103 : vector<16x40xf32> to vector<2x8x40xf32>
    %105 = arith.truncf %104 : vector<2x8x40xf32> to vector<2x8x40xbf16>
    %c0_32 = arith.constant 0 : index
    %c0_33 = arith.constant 0 : index
    %c0_34 = arith.constant 0 : index
    %106 = vector.load %arg10[%c0_32, %c0_33, %c0_34] : memref<2x8x40xbf16, #tpu.memory_space<vmem>>, vector<2x8x40xbf16>
    tpu.vector_store %arg10[%c0_32, %c0_33, %c0_34], %105 {strides = array<i32>} : memref<2x8x40xbf16, #tpu.memory_space<vmem>>, vector<2x8x40xbf16>,
    return
  }
  func.func @transform_0(%arg0: i32) -> (i32, i32, i32) {
    %c0_i32 = arith.constant 0 : i32
    %c0_i32_0 = arith.constant 0 : i32
    %c0_i32_1 = arith.constant 0 : i32
    %c0_i32_2 = arith.constant 0 : i32
    return %c0_i32, %c0_i32_0, %c0_i32_1 : i32, i32, i32
  }
  func.func @transform_1(%arg0: i32) -> (i32, i32, i32) {
    %c0_i32 = arith.constant 0 : i32
    %c0_i32_0 = arith.constant 0 : i32
    %c0_i32_1 = arith.constant 0 : i32
    %c0_i32_2 = arith.constant 0 : i32
    return %c0_i32, %c0_i32_0, %c0_i32_1 : i32, i32, i32
  }
  func.func @transform_2(%arg0: i32) -> (i32, i32, i32, i32) {
    %c0_i32 = arith.constant 0 : i32
    %c0_i32_0 = arith.constant 0 : i32
    %c0_i32_1 = arith.constant 0 : i32
    %c0_i32_2 = arith.constant 0 : i32
    %c0_i32_3 = arith.constant 0 : i32
    return %c0_i32, %c0_i32_0, %c0_i32_1, %c0_i32_2 : i32, i32, i32, i32
  }
  func.func @transform_3(%arg0: i32) -> (i32, i32) {
    %c0_i32 = arith.constant 0 : i32
    %c0_i32_0 = arith.constant 0 : i32
    %c0_i32_1 = arith.constant 0 : i32
    return %c0_i32, %c0_i32_0 : i32, i32
  }
  func.func @transform_4(%arg0: i32) -> (i32, i32) {
    %c0_i32 = arith.constant 0 : i32
    %c0_i32_0 = arith.constant 0 : i32
    %c0_i32_1 = arith.constant 0 : i32
    return %c0_i32, %c0_i32_0 : i32, i32
  }
  func.func @transform_5(%arg0: i32) -> (i32, i32) {
    %c0_i32 = arith.constant 0 : i32
    %c0_i32_0 = arith.constant 0 : i32
    %c0_i32_1 = arith.constant 0 : i32
    return %c0_i32, %c0_i32_0 : i32, i32
  }
  func.func @transform_6(%arg0: i32) -> (i32, i32) {
    %c0_i32 = arith.constant 0 : i32
    %c0_i32_0 = arith.constant 0 : i32
    %c0_i32_1 = arith.constant 0 : i32
    return %c0_i32, %c0_i32_0 : i32, i32
  }
  func.func @transform_7(%arg0: i32) -> (i32, i32) {
    %c0_i32 = arith.constant 0 : i32
    %c0_i32_0 = arith.constant 0 : i32
    %c0_i32_1 = arith.constant 0 : i32
    return %c0_i32, %c0_i32_0 : i32, i32
  }
  func.func @transform_8(%arg0: i32) -> (i32, i32) {
    %c0_i32 = arith.constant 0 : i32
    %c0_i32_0 = arith.constant 0 : i32
    %c0_i32_1 = arith.constant 0 : i32
    return %c0_i32, %c0_i32_0 : i32, i32
  }
  func.func @transform_9(%arg0: i32) -> (i32, i32, i32) {
    %c0_i32 = arith.constant 0 : i32
    %c0_i32_0 = arith.constant 0 : i32
    %c0_i32_1 = arith.constant 0 : i32
    %c0_i32_2 = arith.constant 0 : i32
    return %c0_i32, %c0_i32_0, %c0_i32_1 : i32, i32, i32
  }
}

</mosaic_0001>

<bundles_post_ra>
// kernel: batched_cross_attention.1
= control target key start
LH: loop header
LB: loop body
LE: loop exit
PB: predicated region body
PF: predicated region fallthrough
CT: control target
= control target key end

     0   :  { %14 = vsyncpa [#allocation3], 0  ;;  %s1435_s0 = inlined_call_operand.hbm [shape: bf16[2,8,40], index: 0, kind: input, shape index: {}]   ;;  %s1436_s1 = inlined_call_operand.hbm [shape: bf16[2,16,40], index: 1, kind: input, shape index: {}]   ;;  %s1437_s2 = inlined_call_operand.hbm [shape: bf16[2,5,8,16], index: 2, kind: input, shape index: {}]   ;;  %s1438_s3 = inlined_call_operand.hbm [shape: f32[40,40], index: 3, kind: input, shape index: {}]   ;;  %s1439_s4 = inlined_call_operand.hbm [shape: bf16[40,256], index: 4, kind: input, shape index: {}]   ;;  %s1440_s5 = inlined_call_operand.hbm [shape: bf16[40,256], index: 5, kind: input, shape index: {}]   ;;  %s1441_s6 = inlined_call_operand.vmem [shape: bf16[1,40], index: 6, kind: input, shape index: {}]   ;;  %s1442_s7 = inlined_call_operand.hbm [shape: bf16[40,40], index: 7, kind: input, shape index: {}]   ;;  %s1443_s8 = inlined_call_operand.vmem [shape: bf16[1,40], index: 8, kind: input, shape index: {}]   ;;  %s1444_s9 = inlined_call_operand.hbm [shape: bf16[2,8,40], index: 9, kind: output, shape index: {}]  }
   0x1   :  { %15 = vsyncpa [#allocation6], 0 }
   0x2   :  { %16 = vsyncpa [#allocation9], 0 }
   0x3   :  { %17 = vsyncpa [#allocation12], 0 }
   0x4   :  { %18 = vsyncpa [#allocation4], 0  ;;  %s36_s11 = sshll.u32 %s1436_s1, 4  ;;  %s1147_s12 = smov [#allocation5]   ;;  %s37_s11 = int_to_ptr.hbm [resolvable:$true] %s36_s11 }
   0x5   :  { %s38_s13 = sshll.u32 %s1147_s12, 4  ;;  %s62_s16 = sshll.u32 %s1438_s3, 4  ;;  %s39_s13 = int_to_ptr.vmem [resolvable:$true] %s38_s13  ;;  %s63_s16 = int_to_ptr.hbm [resolvable:$true] %s62_s16 }
   0x6   :  { %s1148_s17 = smov 64   ;;  %s1149_s18 = smov 4  }
   0x7   :  { %44 = dma.hbm_to_vmem [thread:$0]  %s37_s11, 256, %s39_s13, [#allocation6], %s1148_s17, %s1148_s17, %s1149_s18  }
   0x8   :  { %s1150_s19 = smov [#allocation8]   ;;  %s1151_s21 = smov 128  }
   0x9   :  { %s64_s20 = sshll.u32 %s1150_s19, 4  ;;  %s1152_s1 = smov 8   ;;  %s65_s20 = int_to_ptr.vmem [resolvable:$true] %s64_s20 }
   0xa   :  { %70 = dma.hbm_to_vmem [thread:$0]  %s63_s16, 640, %s65_s20, [#allocation9], %s1151_s21, %s1151_s21, %s1152_s1  }
   0xb   :  { %s88_s3 = sshll.u32 %s1440_s5, 4  ;;  %s1153_s24 = smov [#allocation11]   ;;  %s89_s3 = int_to_ptr.hbm [resolvable:$true] %s88_s3 }
   0xc   :  { %s90_s25 = sshll.u32 %s1153_s24, 4  ;;  %s23_s28 = sshll.u32 %s1435_s0, 4  ;;  %s91_s25 = int_to_ptr.vmem [resolvable:$true] %s90_s25  ;;  %s24_s28 = int_to_ptr.hbm [resolvable:$true] %s23_s28 }
   0xd   :  { %96 = dma.hbm_to_vmem [thread:$0]  %s89_s3, 640, %s91_s25, [#allocation12], %s1151_s21, %s1151_s21, %s1152_s1  }
   0xe   :  { %s1154_s29 = smov [#allocation2]   ;;  %s49_s12 = sshll.u32 %s1437_s2, 4  ;;  %s50_s12 = int_to_ptr.hbm [resolvable:$true] %s49_s12 }
   0xf   :  { %s25_s30 = sshll.u32 %s1154_s29, 4  ;;  %s75_s0 = sshll.u32 %s1439_s4, 4  ;;  %s26_s30 = int_to_ptr.vmem [resolvable:$true] %s25_s30  ;;  %s76_s0 = int_to_ptr.hbm [resolvable:$true] %s75_s0 }
  0x10   :  { %31 = dma.hbm_to_vmem [thread:$0]  %s24_s28, 128, %s26_s30, [#allocation3], %s1148_s17, %s1148_s17, %s1149_s18  }
  0x11   :  { %s1155_s14 = smov [#allocation7]   ;;  %s1156_s16 = smov [#allocation10]  }
  0x12   :  { %s51_s15 = sshll.u32 %s1155_s14, 4  ;;  %s77_s2 = sshll.u32 %s1156_s16, 4  ;;  %s52_s15 = int_to_ptr.vmem [resolvable:$true] %s51_s15  ;;  %s78_s2 = int_to_ptr.vmem [resolvable:$true] %s77_s2 }
  0x13   :  { %57 = dma.hbm_to_vmem [thread:$0]  %s50_s12, 640, %s52_s15, [#allocation6], %s1148_s17, %s1148_s17, %s1149_s18  }
  0x14   :  { %s103_s22 = sshll.u32 %s1442_s7, 4  ;;  %s1157_s4 = smov [#allocation13]   ;;  %s104_s22 = int_to_ptr.hbm [resolvable:$true] %s103_s22 }
  0x15   :  { %83 = dma.hbm_to_vmem [thread:$0]  %s76_s0, 640, %s78_s2, [#allocation9], %s1151_s21, %s1151_s21, %s1152_s1  }
  0x16   :  { %s105_s23 = sshll.u32 %s1157_s4, 4  ;;  %s106_s23 = int_to_ptr.vmem [resolvable:$true] %s105_s23 }
  0x17   :  { %111 = dma.hbm_to_vmem [thread:$0]  %s104_s22, 320, %s106_s23, [#allocation12], %s1148_s17, %s1148_s17, %s1149_s18  }
  0x18   :  { %1137 = dma.done.wait [#allocation3], 128  }
  0x19   :  { %1138 = vsyncadd [#allocation3], 4294967168 }
  0x1a   :  { %1139 = dma.done.wait [#allocation6], 896  }
  0x1b   :  { %1140 = vsyncadd [#allocation6], 4294966400 }
  0x1c   :  { %1141 = dma.done.wait [#allocation9], 1280  }
  0x1d   :  { %1142 = vsyncadd [#allocation9], 4294966016 }
  0x1e   :  { %1143 = dma.done.wait [#allocation12], 960  }
  0x1f   :  { %1144 = vsyncadd [#allocation12], 4294966336  ;;  %v1251_v0 = vld [vmem:[#allocation11 + $0x20] sm:$0xff]  ;;  %vm213_vm0 = vcmask 1043456   ;;  %v1254_v2 = vld [vmem:[#allocation10 + $0x20] sm:$0xff]  ;;  %vm209_vm1 = vcmask 326656  }
  0x20   :  { %v276_v1 = vunpack.c.l.b16 %v1251_v0  ;;  %v815_v4 = vld [vmem:[#allocation11 + $0x10] sm:$0xf]  ;;  %v858_v5 = vld [vmem:[#allocation11 + $0x14] sm:$0xf0]  ;;  %v197_v6 = vunpack.c.l.b16 %v1254_v2  ;;  %v789_v9 = vld [vmem:[#allocation10 + $0x10] sm:$0xf] }
  0x21   :  { %v854_v10 = vld [vmem:[#allocation10 + $0x14] sm:$0xf0]  ;;  %v816_v11 = vor.u32 %v858_v5, %v815_v4  ;;  %v807_v12 = vld [vmem:[#allocation11] sm:$0xf]  ;;  %v856_v13 = vld [vmem:[#allocation11 + $0x4] sm:$0xf0] }
  0x22   :  { %v282_v3 = vpack.c.b16 %v276_v1, %v276_v1  ;;  %v203_v8 = vpack.c.b16 %v197_v6, %v197_v6  ;;  %v790_v15 = vor.u32 %v854_v10, %v789_v9  ;;  %v781_v16 = vld [vmem:[#allocation10] sm:$0xf]  ;;  %v852_v17 = vld [vmem:[#allocation10 + $0x4] sm:$0xf0]  ;;  %v808_v18 = vor.u32 %v856_v13, %v807_v12  ;;  %v1261_v21 = vld [vmem:[#allocation2] sm:$0xff]  ;;  %s1158_s3 = smov [#allocation14]  }
  0x23   :  { %v782_v19 = vor.u32 %v852_v17, %v781_v16  ;;  %v1259_v20 = vld [vmem:[#allocation5] sm:$0xff]  ;;  %v1267_v22 = vld [vmem:[#allocation5 + $0x8] sm:$0xff]  ;;  %v1271_v29 = vld [vmem:[#allocation8] sm:$0xff]  ;;  %vm437_vm2 = vcmask 130048   ;;  %vm750_vm11 = vcmask 322560   ;;  %s757_s24 = sshll.u32 %s1158_s3, 4  ;;  %s758_s24 = int_to_ptr.vmem [resolvable:$true] %s757_s24 }
  0x24   :  { %v295_v7 = vsel %vm213_vm0, %v282_v3, 0  ;;  %v215_v14 = vsel %vm213_vm0, %v203_v8, 0  ;;  %v1273_v30 = vld [vmem:[#allocation8 + $0x8] sm:$0xff]  ;;  %v1279_v45 = vld [vmem:[#allocation8 + $0x10] sm:$0xff]  ;;  %v1281_v46 = vld [vmem:[#allocation8 + $0x18] sm:$0xff]  ;;  %s759_s27 = sshll.u32 %s1444_s9, 4  ;;  %s760_s27 = int_to_ptr.hbm [resolvable:$true] %s759_s27 }
  0x25   :  { %305 = vmatpush.bf16.msra.mxu2 %v295_v7  ;;  %225 = vmatpush.bf16.msra.mxu0 %v215_v14  ;;  %v1290_v54 = vld [vmem:[#allocation8 + $0x20] sm:$0xff]  ;;  %v862_v62 = vld [vmem:[#allocation7] sm:$0xff]   ;;  %v882_v10 = vld [vmem:[#allocation7 + $0x10] sm:$0xff]  }
  0x26   :  { %v863_v63 = vunpack.c.l.bf16 %v862_v62  ;;  %v864_v5 = vunpack.c.h.bf16 %v862_v62  ;;  %v881_v12 = vld [vmem:[#allocation7 + $0x8] sm:$0xff]   ;;  %v883_v17 = vld [vmem:[#allocation7 + $0x18] sm:$0xff]  }
  0x27   :  { %v868_v13 = vunpack.c.h.bf16 %v881_v12 }
  0x29   :  { %306 = vmatpush.bf16.msra.mxu2 %v816_v11  ;;  %226 = vmatpush.bf16.msra.mxu0 %v790_v15  ;;  %v872_v11 = vunpack.c.h.bf16 %v882_v10 }
  0x2d   :  { %307 = vmatpush.bf16.msra.mxu2 %v808_v18  ;;  %227 = vmatpush.bf16.msra.mxu0 %v782_v19 }
  0x30   :  { %821 = vmatmul.msk.bf16.vlgmr.msra.gmra.mxu2 %vm209_vm1, %v1259_v20  ;;  %795 = vmatmul.msk.bf16.vlgmr.msra.gmra.mxu0 %vm209_vm1, %v1261_v21 }
  0x40   :  { %822 = vmatmul.msk.bf16.gmra.mxu2 %vm209_vm1, %v1267_v22 }
  0xad   :  { %v229_v31 = vpop.f32.mrf.mxu0 }
  0xae   :  { %v389_v34 = vmul.f32 %v229_v31, %v1271_v29  ;;  %v390_v35 = vmul.f32 %v229_v31, %v1273_v30  ;;  %v391_v50 = vmul.f32 %v229_v31, %v1279_v45  ;;  %v392_v51 = vmul.f32 %v229_v31, %v1281_v46 }
  0xaf   :  { %v393_v55 = vmul.f32 %v229_v31, %v1290_v54 }
  0xb0   :  { %v394_v37 = vpack.c.bf16 %v390_v35, %v389_v34  ;;  %v395_v52 = vpack.c.bf16 %v392_v51, %v391_v50  ;;  %v867_v34 = vunpack.c.l.bf16 %v881_v12 }
  0xb1   :  { %v396_v58 = vpack.c.bf16 %v393_v55, %v393_v55 }
  0xb3   :  { %v309_v23 = vpop.f32.mrf.mxu2 }
  0xb4   :  { %v381_v24 = vpack.c.bf16 %v309_v23, %v309_v23 }
  0xb5   :  { %v231_v44 = vpop.f32.mrf.mxu0 }
  0xb6   :  { %v399_v27 = vunpack.c.l.b16 %v381_v24  ;;  %v545_v48 = vmul.f32 %v231_v44, %v1271_v29  ;;  %v546_v49 = vmul.f32 %v231_v44, %v1273_v30  ;;  %v547_v56 = vmul.f32 %v231_v44, %v1279_v45 }
  0xb7   :  { %v548_v57 = vmul.f32 %v231_v44, %v1281_v46  ;;  %v549_v60 = vmul.f32 %v231_v44, %v1290_v54  ;;  %v875_v24 = vunpack.c.l.bf16 %v883_v17 }
  0xb8   :  { %v550_v53 = vpack.c.bf16 %v546_v49, %v545_v48  ;;  %v871_v48 = vunpack.c.l.bf16 %v882_v10 }
  0xb9   :  { %v551_v59 = vpack.c.bf16 %v548_v57, %v547_v56  ;;  %v552_v61 = vpack.c.bf16 %v549_v60, %v549_v60 }
  0xbb   :  { %v311_v25 = vpop.f32.mrf.mxu2 }
  0xbc   :  { %v382_v26 = vpack.c.bf16 %v311_v25, %v311_v25 }
  0xbe   :  { %v400_v28 = vunpack.c.l.b16 %v382_v26  ;;  %v277_v26 = vunpack.c.h.b16 %v1251_v0 }
  0xc0   :  { %v401_v32 = vpack.c.b16 %v400_v28, %v399_v27  ;;  %v283_v31 = vpack.c.b16 %v277_v26, %v277_v26 }
  0xc2   :  { %v412_v33 = vsel %vm209_vm1, %v401_v32, 0  ;;  %v857_v32 = vld [vmem:[#allocation11 + $0x14] sm:$0xf] }
  0xc3   :  { %v314_v36 = vpop.f32.mrf.mxu2  ;;  %421 = vmatpush.bf16.xpose.msrb.mxu0 %v412_v33  ;;  %v817_v33 = vld [vmem:[#allocation11 + $0x18] sm:$0xf0] }
  0xc4   :  { %v383_v38 = vpack.c.bf16 %v314_v36, %v314_v36  ;;  %v298_v36 = vsel %vm213_vm0, %v283_v31, 0 }
  0xc5   :  { %324 = vmatpush.bf16.msra.mxu3 %v298_v36 }
  0xc6   :  { %v555_v41 = vunpack.c.l.b16 %v383_v38  ;;  %v820_v38 = vor.u32 %v857_v32, %v817_v33 }
  0xc9   :  { %325 = vmatpush.bf16.msra.mxu3 %v820_v38 }
  0xca   :  { %827 = vmatmul.msk.bf16.vlgmr.msrb.gmra.mxu0 %vm209_vm1, %v394_v37  ;;  %v876_v37 = vunpack.c.h.bf16 %v883_v17 }
  0xcb   :  { %v316_v39 = vpop.f32.mrf.mxu2 }
  0xcc   :  { %v384_v40 = vpack.c.bf16 %v316_v39, %v316_v39  ;;  %v855_v39 = vld [vmem:[#allocation11 + $0x4] sm:$0xf] }
  0xce   :  { %v556_v42 = vunpack.c.l.b16 %v384_v40  ;;  %v809_v40 = vld [vmem:[#allocation11 + $0x8] sm:$0xf0] }
  0xcf   :  { %v812_v0 = vor.u32 %v855_v39, %v809_v40 }
  0xd0   :  { %v557_v43 = vpack.c.b16 %v556_v42, %v555_v41 }
  0xd1   :  { %326 = vmatpush.bf16.msra.mxu3 %v812_v0 }
  0xd2   :  { %v568_v47 = vsel %vm209_vm1, %v557_v43, 0 }
  0xd3   :  { %577 = vmatpush.bf16.xpose.msrb.mxu2 %v568_v47  ;;  %v884_v47 = vld [vmem:[#allocation7 + $0x20] sm:$0xff]  }
  0xd4   :  { %v879_v51 = vunpack.c.l.bf16 %v884_v47  ;;  %823 = vmatmul.msk.bf16.vlgmr.msra.gmra.mxu3 %vm209_vm1, %v1259_v20 }
  0xda   :  { %828 = vmatmul.msk.bf16.gmra.mxu0 %vm209_vm1, %v395_v52  ;;  %833 = vmatmul.msk.bf16.vlgmr.msrb.gmra.mxu2 %vm209_vm1, %v550_v53 }
  0xe4   :  { %824 = vmatmul.msk.bf16.gmra.mxu3 %vm209_vm1, %v1267_v22 }
  0xea   :  { %829 = vmatmul.msk.bf16.gmra.mxu0 %vm209_vm1, %v396_v58  ;;  %834 = vmatmul.msk.bf16.gmra.mxu2 %vm209_vm1, %v551_v59  ;;  %v880_v58 = vunpack.c.h.bf16 %v884_v47 }
  0xfa   :  { %835 = vmatmul.msk.bf16.gmra.mxu2 %vm209_vm1, %v552_v61 }
 0x147   :  { %v423_v1 = vpop.f32.mrf.mxu0 }
 0x148   :  { %v1299_v3 = vadd.f32 %v863_v63, %v423_v1 }
 0x14a   :  { %v438_v4 = vsel %vm437_vm2, %v1299_v3, -inf }
 0x14b   :  { %439 = vmax.xlane.f32.xlu1 %v438_v4 }
 0x14f   :  { %v425_v6 = vpop.f32.mrf.mxu0 }
 0x150   :  { %v1303_v7 = vadd.f32 %v864_v5, %v425_v6 }
 0x152   :  { %v441_v8 = vsel %vm437_vm2, %v1303_v7, -inf }
 0x153   :  { %442 = vmax.xlane.f32.xlu1 %v441_v8 }
 0x157   :  { %v428_v9 = vpop.f32.mrf.mxu0 }
 0x158   :  { %v429_v41 = vadd.f32 %v867_v34, %v428_v9 }
 0x15a   :  { %v444_v50 = vsel %vm437_vm2, %v429_v41, -inf }
 0x15d   :  { %v579_v14 = vpop.f32.mrf.mxu2 }
 0x15e   :  { %v1307_v15 = vadd.f32 %v872_v11, %v579_v14 }
 0x15f   :  { %v430_v16 = vpop.f32.mrf.mxu0 }
 0x160   :  { %v1309_v18 = vadd.f32 %v868_v13, %v430_v16  ;;  %v593_v19 = vsel %vm437_vm2, %v1307_v15, -inf }
 0x161   :  { %594 = vmax.xlane.f32.xlu0 %v593_v19 }
 0x162   :  { %v447_v23 = vsel %vm437_vm2, %v1309_v18, -inf }
 0x163   :  { %448 = vmax.xlane.f32.xlu1 %v447_v23 }
 0x165   :  { %v581_v25 = vpop.f32.mrf.mxu2 }
 0x166   :  { %v582_v27 = vadd.f32 %v875_v24, %v581_v25 }
 0x167   :  { %v433_v28 = vpop.f32.mrf.mxu0 }
 0x168   :  { %v596_v35 = vsel %vm437_vm2, %v582_v27, -inf  ;;  %v434_v52 = vadd.f32 %v871_v48, %v433_v28 }
 0x169   :  { %597 = vmax.xlane.f32.xlu0 %v596_v35 }
 0x16a   :  { %v450_v57 = vsel %vm437_vm2, %v434_v52, -inf }
 0x16d   :  { %v584_v42 = vpop.f32.mrf.mxu2 }
 0x16e   :  { %v585_v43 = vadd.f32 %v876_v37, %v584_v42 }
 0x16f   :  { %v435_v44 = vpop.f32.mrf.mxu0 }
 0x170   :  { %v599_v49 = vsel %vm437_vm2, %v585_v43, -inf }
 0x171   :  { %600 = vmax.xlane.f32.xlu2 %v599_v49  ;;  %445 = vmax.xlane.f32.xlu0 %v444_v50 }
 0x175   :  { %v586_v53 = vpop.f32.mrf.mxu2 }
 0x176   :  { %v587_v55 = vadd.f32 %v879_v51, %v586_v53 }
 0x178   :  { %v602_v56 = vsel %vm437_vm2, %v587_v55, -inf }
 0x179   :  { %603 = vmax.xlane.f32.xlu2 %v602_v56  ;;  %451 = vmax.xlane.f32.xlu0 %v450_v57  ;;  %v328_v56 = vpop.f32.mrf.mxu3  ;;  %v198_v57 = vunpack.c.h.b16 %v1254_v2 }
 0x17d   :  { %v589_v59 = vpop.f32.mrf.mxu2 }
 0x17e   :  { %v1324_v60 = vadd.f32 %v880_v58, %v589_v59  ;;  %v204_v58 = vpack.c.b16 %v198_v57, %v198_v57 }
 0x180   :  { %v605_v61 = vsel %vm437_vm2, %v1324_v60, -inf  ;;  %v218_v59 = vsel %vm213_vm0, %v204_v58, 0 }
 0x181   :  { %606 = vmax.xlane.f32.xlu2 %v605_v61  ;;  %239 = vmatpush.bf16.msra.mxu1 %v218_v59  ;;  %v853_v61 = vld [vmem:[#allocation10 + $0x14] sm:$0xf]  ;;  %v338_v59 = vld [vmem:[%s1441_s6] sm:$0x1] }
 0x185   :  { %v591_v62 = vpop.f32.mrf.mxu2 }
 0x186   :  { %v791_v62 = vld [vmem:[#allocation10 + $0x18] sm:$0xf0] }
 0x1be   :  { %v440_v20 = vpop.xlane.xlu1 %439 }
 0x1bf   :  { %v453_v63 = vsub.f32 %v1299_v3, %v440_v20  ;;  %v794_v20 = vor.u32 %v853_v61, %v791_v62 }
 0x1c1   :  { %v458_v1 = vmul.f32 1.442695, %v453_v63  ;;  %v330_v63 = vpop.f32.mrf.mxu3  ;;  %240 = vmatpush.bf16.msra.mxu1 %v794_v20 }
 0x1c3   :  { %897 = vpow2.f32 %v458_v1  ;;  %v851_v1 = vld [vmem:[#allocation10 + $0x4] sm:$0xf] }
 0x1c6   :  { %v443_v6 = vpop.xlane.xlu1 %442 }
 0x1c7   :  { %v454_v10 = vsub.f32 %v1303_v7, %v443_v6 }
 0x1c9   :  { %v1331_v4 = vpop.eup %897  ;;  %v460_v22 = vmul.f32 1.442695, %v454_v10  ;;  %v333_v2 = vpop.f32.mrf.mxu3 }
 0x1ca   :  { %v468_v5 = vsel %vm437_vm2, %v1331_v4, 0.0 }
 0x1cb   :  { %469 = vadd.xlane.f32.xlu0 %v468_v5  ;;  %v783_v5 = vld [vmem:[#allocation10 + $0x8] sm:$0xf0] }
 0x1d4   :  { %v595_v8 = vpop.xlane.xlu0 %594 }
 0x1d5   :  { %v608_v9 = vsub.f32 %v1307_v15, %v595_v8  ;;  %v386_v8 = vpack.c.bf16 %v330_v63, %v330_v63 }
 0x1d6   :  { %v449_v17 = vpop.xlane.xlu1 %448 }
 0x1d7   :  { %v613_v11 = vmul.f32 1.442695, %v608_v9  ;;  %v456_v26 = vsub.f32 %v1309_v18, %v449_v17  ;;  %v786_v9 = vor.u32 %v851_v1, %v783_v5  ;;  %v499_v10 = vunpack.c.l.b16 %v386_v8 }
 0x1d9   :  { %899 = vpow2.f32 %v613_v11  ;;  %v464_v33 = vmul.f32 1.442695, %v456_v26  ;;  %241 = vmatpush.bf16.msra.mxu1 %v786_v9 }
 0x1da   :  { %901 = vpow2.f32 %v460_v22  ;;  %v387_v22 = vpack.c.bf16 %v333_v2, %v333_v2 }
 0x1dc   :  { %v598_v12 = vpop.xlane.xlu0 %597  ;;  %796 = vmatmul.msk.bf16.vlgmr.msra.gmra.mxu1 %vm209_vm1, %v1261_v21 }
 0x1dd   :  { %v609_v13 = vsub.f32 %v582_v27, %v598_v12  ;;  %v335_v12 = vpop.f32.mrf.mxu3 }
 0x1df   :  { %v1337_v3 = vpop.eup %899  ;;  %v615_v14 = vmul.f32 1.442695, %v609_v13  ;;  %v388_v13 = vpack.c.bf16 %v335_v12, %v335_v12 }
 0x1e0   :  { %v623_v16 = vsel %vm437_vm2, %v1337_v3, 0.0  ;;  %v1341_v15 = vpop.eup %901 }
 0x1e1   :  { %903 = vpow2.f32 %v615_v14  ;;  %624 = vadd.xlane.f32.xlu1 %v623_v16  ;;  %v471_v32 = vsel %vm437_vm2, %v1341_v15, 0.0  ;;  %v653_v14 = vunpack.c.l.b16 %v387_v22  ;;  %v654_v16 = vunpack.c.l.b16 %v388_v13 }
 0x1e3   :  { %v655_v17 = vpack.c.b16 %v654_v16, %v653_v14  ;;  %v860_v14 = vld [vmem:[#allocation13 + $0x8] sm:$0xff] }
 0x1e4   :  { %v601_v19 = vpop.xlane.xlu2 %600  ;;  %v446_v23 = vpop.xlane.xlu0 %445 }
 0x1e5   :  { %v610_v7 = vsub.f32 %v585_v43, %v601_v19  ;;  %v455_v24 = vsub.f32 %v429_v41, %v446_v23  ;;  %673 = vmatpush.bf16.msrb.mxu3 %v655_v17 }
 0x1e7   :  { %v1343_v25 = vpop.eup %903  ;;  %v617_v27 = vmul.f32 1.442695, %v610_v7  ;;  %v462_v28 = vmul.f32 1.442695, %v455_v24 }
 0x1e8   :  { %v626_v31 = vsel %vm437_vm2, %v1343_v25, 0.0 }
 0x1e9   :  { %905 = vpow2.f32 %v617_v27  ;;  %627 = vadd.xlane.f32.xlu2 %v626_v31  ;;  %472 = vadd.xlane.f32.xlu1 %v471_v32 }
 0x1ea   :  { %907 = vpow2.f32 %v462_v28 }
 0x1eb   :  { %909 = vpow2.f32 %v464_v33 }
 0x1ec   :  { %v604_v34 = vpop.xlane.xlu2 %603  ;;  %v452_v35 = vpop.xlane.xlu0 %451 }
 0x1ed   :  { %v611_v36 = vsub.f32 %v587_v55, %v604_v34  ;;  %v457_v37 = vsub.f32 %v434_v52, %v452_v35 }
 0x1ef   :  { %v1350_v38 = vpop.eup %905  ;;  %v619_v18 = vmul.f32 1.442695, %v611_v36  ;;  %v466_v39 = vmul.f32 1.442695, %v457_v37 }
 0x1f0   :  { %v1352_v40 = vpop.eup %907  ;;  %v629_v41 = vsel %vm437_vm2, %v1350_v38, 0.0 }
 0x1f1   :  { %911 = vpow2.f32 %v619_v18  ;;  %630 = vadd.xlane.f32.xlu2 %v629_v41  ;;  %v474_v42 = vsel %vm437_vm2, %v1352_v40, 0.0  ;;  %v1358_v0 = vpop.eup %909 }
 0x1f2   :  { %913 = vpow2.f32 %v466_v39  ;;  %475 = vadd.xlane.f32.xlu1 %v474_v42  ;;  %v477_v51 = vsel %vm437_vm2, %v1358_v0, 0.0 }
 0x1f4   :  { %v607_v43 = vpop.xlane.xlu2 %606 }
 0x1f5   :  { %v612_v44 = vsub.f32 %v1324_v60, %v607_v43  ;;  %v385_v60 = vpack.c.bf16 %v328_v56, %v328_v56 }
 0x1f7   :  { %v1361_v47 = vpop.eup %911  ;;  %v621_v48 = vmul.f32 1.442695, %v612_v44  ;;  %v498_v6 = vunpack.c.l.b16 %v385_v60  ;;  %v339_v60 = vunpack.c.l.bf16 %v338_v59 }
 0x1f8   :  { %v1363_v49 = vpop.eup %913  ;;  %v632_v50 = vsel %vm437_vm2, %v1361_v47, 0.0 }
 0x1f9   :  { %915 = vpow2.f32 %v621_v48  ;;  %633 = vadd.xlane.f32.xlu0 %v632_v50  ;;  %v480_v52 = vsel %vm437_vm2, %v1363_v49, 0.0  ;;  %478 = vadd.xlane.f32.xlu2 %v477_v51  ;;  %v500_v11 = vpack.c.b16 %v499_v10, %v498_v6  ;;  %v340_v61 = vperm.slane %v339_v60, 0 }
 0x1fa   :  { %481 = vadd.xlane.f32.xlu1 %v480_v52 }
 0x1fb   :  { %518 = vmatpush.bf16.msrb.mxu1 %v500_v11 }
 0x1ff   :  { %v1371_v53 = vpop.eup %915 }
 0x200   :  { %v635_v55 = vsel %vm437_vm2, %v1371_v53, 0.0 }
 0x201   :  { %636 = vadd.xlane.f32.xlu0 %v635_v55 }
 0x23e   :  { %v470_v23 = vpop.xlane.xlu0 %469 }
 0x254   :  { %v625_v19 = vpop.xlane.xlu1 %624 }
 0x255   :  { %917 = vrcp.f32 %v625_v19  ;;  %v859_v19 = vld [vmem:[#allocation13] sm:$0xff] }
 0x256   :  { %919 = vrcp.f32 %v470_v23 }
 0x25b   :  { %v918_v26 = vpop.eup %917 }
 0x25c   :  { %v628_v7 = vpop.xlane.xlu2 %627  ;;  %v473_v24 = vpop.xlane.xlu1 %472  ;;  %v643_v21 = vmul.f32 %v918_v26, %v1337_v3 }
 0x25d   :  { %921 = vrcp.f32 %v628_v7  ;;  %v920_v27 = vpop.eup %919 }
 0x25e   :  { %923 = vrcp.f32 %v473_v24  ;;  %v488_v34 = vmul.f32 %v920_v27, %v1331_v4 }
 0x263   :  { %v922_v28 = vpop.eup %921 }
 0x264   :  { %v924_v31 = vpop.eup %923  ;;  %v644_v32 = vmul.f32 %v922_v28, %v1343_v25  ;;  %v631_v33 = vpop.xlane.xlu2 %630 }
 0x265   :  { %v489_v35 = vmul.f32 %v924_v31, %v1341_v15  ;;  %v476_v18 = vpop.xlane.xlu1 %475  ;;  %925 = vrcp.f32 %v631_v33 }
 0x266   :  { %v648_v36 = vpack.c.bf16 %v644_v32, %v643_v21  ;;  %927 = vrcp.f32 %v476_v18 }
 0x267   :  { %v493_v37 = vpack.c.bf16 %v489_v35, %v488_v34 }
 0x268   :  { %836 = vmatmul.msk.bf16.vlgmr.msrb.gmra.mxu3 %vm437_vm2, %v648_v36 }
 0x269   :  { %830 = vmatmul.msk.bf16.vlgmr.msrb.gmra.mxu1 %vm437_vm2, %v493_v37 }
 0x26b   :  { %v926_v3 = vpop.eup %925 }
 0x26c   :  { %v634_v39 = vpop.xlane.xlu0 %633  ;;  %v479_v41 = vpop.xlane.xlu2 %478  ;;  %v645_v4 = vmul.f32 %v926_v3, %v1350_v38 }
 0x26d   :  { %929 = vrcp.f32 %v634_v39  ;;  %v928_v25 = vpop.eup %927  ;;  %v482_v52 = vpop.xlane.xlu1 %481 }
 0x26e   :  { %931 = vrcp.f32 %v479_v41  ;;  %v490_v44 = vmul.f32 %v928_v25, %v1352_v40 }
 0x273   :  { %v930_v42 = vpop.eup %929 }
 0x274   :  { %v932_v43 = vpop.eup %931  ;;  %v646_v15 = vmul.f32 %v930_v42, %v1361_v47  ;;  %v637_v50 = vpop.xlane.xlu0 %636 }
 0x275   :  { %v491_v48 = vmul.f32 %v932_v43, %v1358_v0  ;;  %933 = vrcp.f32 %v637_v50  ;;  %v243_v0 = vpop.f32.mrf.mxu1 }
 0x276   :  { %v649_v51 = vpack.c.bf16 %v646_v15, %v645_v4  ;;  %935 = vrcp.f32 %v482_v52  ;;  %v341_v63 = vadd.f32 %v340_v61, %v243_v0 }
 0x277   :  { %v494_v55 = vpack.c.bf16 %v491_v48, %v490_v44 }
 0x278   :  { %837 = vmatmul.msk.bf16.gmra.mxu3 %vm437_vm2, %v649_v51 }
 0x279   :  { %831 = vmatmul.msk.bf16.gmra.mxu1 %vm437_vm2, %v494_v55 }
 0x27b   :  { %v934_v56 = vpop.eup %933 }
 0x27c   :  { %v936_v57 = vpop.eup %935  ;;  %v647_v38 = vmul.f32 %v934_v56, %v1371_v53  ;;  %v710_v53 = vld [vmem:[#allocation13 + $0x10] sm:$0xf] }
 0x27d   :  { %v492_v47 = vmul.f32 %v936_v57, %v1363_v49  ;;  %v245_v62 = vpop.f32.mrf.mxu1  ;;  %v723_v5 = vunpack.c.l.b16 %v710_v53  ;;  %v825_v49 = vmul.f32 -1.442695, %v341_v63 }
 0x27e   :  { %v650_v58 = vpack.c.bf16 %v647_v38, %v647_v38  ;;  %v342_v20 = vadd.f32 %v340_v61, %v245_v62 }
 0x27f   :  { %v495_v40 = vpack.c.bf16 %v492_v47, %v492_v47  ;;  %v726_v6 = vpack.c.b16 %v723_v5, %v723_v5 }
 0x280   :  { %v826_v1 = vmul.f32 -1.442695, %v342_v20 }
 0x281   :  { %v732_v9 = vsel %vm213_vm0, %v726_v6, 0 }
 0x282   :  { %937 = vpow2.f32 %v826_v1  ;;  %739 = vmatpush.bf16.msra.mxu0 %v732_v9 }
 0x283   :  { %939 = vpow2.f32 %v825_v49 }
 0x286   :  { %740 = vmatpush.bf16.msra.mxu0 %v860_v14 }
 0x288   :  { %838 = vmatmul.msk.bf16.gmra.mxu3 %vm437_vm2, %v650_v58  ;;  %v938_v10 = vpop.eup %937 }
 0x289   :  { %832 = vmatmul.msk.bf16.gmra.mxu1 %vm437_vm2, %v495_v40  ;;  %v940_v2 = vpop.eup %939  ;;  %v350_v22 = vadd.f32 1.0, %v938_v10 }
 0x28a   :  { %v349_v13 = vadd.f32 1.0, %v940_v2  ;;  %741 = vmatpush.bf16.msra.mxu0 %v859_v19 }
 0x28b   :  { %941 = vrcp.f32 %v350_v22  ;;  %vm371_vm3 = vweird.f32 %v350_v22  ;;  %v377_v37 = vand.u32 2147483648, %v350_v22  ;;  %v375_v43 = vand.u32 2147483647, %v350_v22 }
 0x28c   :  { %943 = vrcp.f32 %v349_v13  ;;  %vm356_vm5 = vweird.f32 %v349_v13  ;;  %v362_v50 = vand.u32 2147483648, %v349_v13  ;;  %v360_v52 = vand.u32 2147483647, %v349_v13 }
 0x28d   :  { %v378_v57 = vor.u32 1.1754944e-38, %v377_v37  ;;  %vm376_vm9 = vcmp.eq.f32.partialorder %v375_v43, 8.507059e+37 }
 0x28e   :  { %v363_v0 = vor.u32 1.1754944e-38, %v362_v50  ;;  %vm361_vm10 = vcmp.eq.f32.partialorder %v360_v52, 8.507059e+37 }
 0x291   :  { %v942_v23 = vpop.eup %941 }
 0x292   :  { %v944_v7 = vpop.eup %943  ;;  %v367_v24 = vmul.f32 %v942_v23, %v350_v22  ;;  %vm372_vm4 = vweird.f32 %v942_v23 }
 0x293   :  { %v352_v27 = vmul.f32 %v944_v7, %v349_v13  ;;  %vm357_vm6 = vweird.f32 %v944_v7  ;;  %vm1409_vm7 = vmor %vm371_vm3, %vm372_vm4 }
 0x294   :  { %v368_v31 = vsub.f32 1.0, %v367_v24  ;;  %vm1415_vm8 = vmor %vm356_vm5, %vm357_vm6 }
 0x295   :  { %v353_v21 = vsub.f32 1.0, %v352_v27 }
 0x296   :  { %v369_v33 = vmul.f32 %v942_v23, %v368_v31 }
 0x297   :  { %v354_v36 = vmul.f32 %v944_v7, %v353_v21 }
 0x298   :  { %v370_v42 = vadd.f32 %v942_v23, %v369_v33 }
 0x2e6   :  { %v520_v8 = vpop.f32.mrf.mxu1 }
 0x2e7   :  { %v534_v18 = vmul.f32 %v520_v8, %v1271_v29 }
 0x2eb   :  { %v675_v11 = vpop.f32.mrf.mxu3 }
 0x2ec   :  { %v689_v39 = vmul.f32 %v675_v11, %v1271_v29  ;;  %v355_v29 = vadd.f32 %v944_v7, %v354_v36 }
 0x2ee   :  { %v522_v12 = vpop.f32.mrf.mxu1  ;;  %v359_v59 = vsel %vm1415_vm8, %v944_v7, %v355_v29 }
 0x2ef   :  { %v535_v34 = vmul.f32 %v522_v12, %v1273_v30  ;;  %v364_v1 = vsel %vm361_vm10, %v363_v0, %v359_v59 }
 0x2f1   :  { %v539_v4 = vadd.f32 %v535_v34, %v534_v18 }
 0x2f3   :  { %v677_v16 = vpop.f32.mrf.mxu3 }
 0x2f4   :  { %v690_v35 = vmul.f32 %v677_v16, %v1273_v30 }
 0x2f6   :  { %v525_v17 = vpop.f32.mrf.mxu1  ;;  %v694_v15 = vadd.f32 %v690_v35, %v689_v39 }
 0x2f7   :  { %v536_v41 = vmul.f32 %v525_v17, %v1279_v45 }
 0x2fb   :  { %v680_v26 = vpop.f32.mrf.mxu3 }
 0x2fc   :  { %v691_v3 = vmul.f32 %v680_v26, %v1279_v45  ;;  %v540_v45 = vadd.f32 %v539_v4, %v536_v41 }
 0x2fe   :  { %v527_v28 = vpop.f32.mrf.mxu1  ;;  %v695_v51 = vadd.f32 %v694_v15, %v691_v3 }
 0x2ff   :  { %v537_v30 = vmul.f32 %v527_v28, %v1281_v46 }
 0x301   :  { %v541_v47 = vadd.f32 %v540_v45, %v537_v30 }
 0x303   :  { %v682_v32 = vpop.f32.mrf.mxu3 }
 0x304   :  { %v692_v44 = vmul.f32 %v682_v32, %v1281_v46  ;;  %v374_v46 = vsel %vm1409_vm7, %v942_v23, %v370_v42 }
 0x305   :  { %v379_v20 = vsel %vm376_vm9, %v378_v57, %v374_v46 }
 0x306   :  { %v530_v25 = vpop.f32.mrf.mxu1  ;;  %v696_v58 = vadd.f32 %v695_v51, %v692_v44 }
 0x307   :  { %v538_v55 = vmul.f32 %v530_v25, %v1290_v54 }
 0x309   :  { %v542_v60 = vadd.f32 %v541_v47, %v538_v55 }
 0x30b   :  { %v685_v38 = vpop.f32.mrf.mxu3  ;;  %v543_v53 = vmul.f32 %v542_v60, %v364_v1 }
 0x30c   :  { %v693_v40 = vmul.f32 %v685_v38, %v1290_v54  ;;  %v711_v54 = vld [vmem:[%s1443_s8] sm:$0x1] }
 0x30d   :  { %v544_v8 = vpack.c.bf16 %v543_v53, %v543_v53  ;;  %v712_v11 = vunpack.c.l.bf16 %v711_v54 }
 0x30e   :  { %v697_v61 = vadd.f32 %v696_v58, %v693_v40  ;;  %v532_v62 = vpop.f32.mrf.mxu1 }
 0x30f   :  { %v713_v2 = vperm.slane %v712_v11, 0 }
 0x310   :  { %v698_v63 = vmul.f32 %v697_v61, %v379_v20 }
 0x312   :  { %v699_v5 = vpack.c.bf16 %v698_v63, %v698_v63 }
 0x313   :  { %v687_v49 = vpop.f32.mrf.mxu3 }
 0x314   :  { %v701_v6 = vunpack.c.l.b16 %v699_v5 }
 0x316   :  { %v702_v9 = vpack.c.b16 %v701_v6, %v701_v6 }
 0x318   :  { %v705_v10 = vsel %vm213_vm0, %v544_v8, %v702_v9 }
 0x319   :  { %847 = vmatmul.msk.bf16.vlgmr.msra.gmra.mxu0 %vm209_vm1, %v705_v10 }
 0x396   :  { %v743_v22 = vpop.f32.mrf.mxu0 }
 0x397   :  { %v744_v12 = vadd.f32 %v743_v22, %v713_v2 }
 0x399   :  { %v748_v13 = vpack.c.bf16 %v744_v12, %v744_v12 }
 0x39b   :  { %751 = vst.msk [vmem:[#allocation14] sm:$0xf] %vm750_vm11, %v748_v13 }
 0x39e   :  { %v745_v14 = vpop.f32.mrf.mxu0 }
 0x39f   :  { %v746_v16 = vadd.f32 %v745_v14, %v713_v2 }
 0x3a1   :  { %v749_v17 = vpack.c.bf16 %v746_v16, %v746_v16 }
 0x3a3   :  { %752 = vst.msk [vmem:[#allocation14 + $0x4] sm:$0xf] %vm750_vm11, %v749_v17 }
 0x3a4   :  { %765 = dma.vmem_to_hbm [thread:$0]  %s758_s24, 128, %s760_s27, [#allocation4], %s1148_s17, %s1148_s17, %s1149_s18  }
 0x3a5   :  { %1145 = dma.done.wait [#allocation4], 128  }
 0x3a6   :  { %1146 = vsyncadd [#allocation4], 4294967168 }
 0x3a7   :  { %770 = vsyncpa [#allocation3], 1 }
 0x3a8   :  { %771 = vsyncpa [#allocation6], 1 }
 0x3a9   :  { %772 = vsyncpa [#allocation9], 1 }
 0x3aa   :  { %773 = vsyncpa [#allocation12], 1 }
 0x3ab   :  { %774 = vsyncpa [#allocation4], 1 }

</bundles_post_ra>
